<compile_context>
chip_gen: v5e
topology: v5e:2x2
jax: 0.10.0
libtpu: 0.0.40
codegen_flags: <defaults>
</compile_context>

<pallas_src>
import functools

import jax
import jax.numpy as jnp
from jax.experimental import pallas as pl
from jax.experimental.pallas import tpu as pltpu


def _round_up(x, m):
    return ((x + m - 1) // m) * m


def _det_in_kernel(scale,
                   o_ref, on_ref,
                   we1_ref, be1_ref, we2_ref, be2_ref, we3_ref, be3_ref,
                   wi1a_ref, wi1b_ref, bi1_ref,
                   wi2_ref, bi2_ref, wi3_ref, bi3_ref,
                   z_ref, a_ref,
                   x_scratch):
    """Whole forward pass for one batch tile, entirely in VMEM."""
    tm = o_ref.shape[0]

    def _mm(x, w_ref):
        # bf16 operands, f32 accumulation on the MXU.
        return jnp.dot(x.astype(jnp.bfloat16), w_ref[...],
                       preferred_element_type=jnp.float32)

    def _lin(x, w_ref, b_ref):
        return _mm(x, w_ref) + b_ref[...]

    def encode(x):
        h = jnp.maximum(_lin(x, we1_ref, be1_ref), 0.0)
        h = jnp.maximum(_lin(h, we2_ref, be2_ref), 0.0)
        return _lin(h, we3_ref, be3_ref)

    # Fused encoder: stack o / o_next along the sublane (batch) axis so the
    # encoder runs once on [2*tm, o_dim].  Scratch is bf16 -> the first matmul
    # consumes it directly without a per-tile f32->bf16 cast pass.
    x_scratch[0:tm, :] = o_ref[...].astype(x_scratch.dtype)
    x_scratch[tm:, :] = on_ref[...].astype(x_scratch.dtype)
    z_all = encode(x_scratch[...])           # [2*tm, ZP] f32
    z = z_all[:tm]
    z_next = z_all[tm:]

    # Inverse model: Linear on concat(z, z_next) expressed as split matmuls
    # (padded rows of wi1a/wi1b are zero, so the z lane-padding is inert).
    h = _mm(z, wi1a_ref) + _mm(z_next, wi1b_ref) + bi1_ref[...]
    h = jnp.maximum(h, 0.0)
    h = jnp.maximum(_lin(h, wi2_ref, bi2_ref), 0.0)
    a = scale * jnp.tanh(_lin(h, wi3_ref, bi3_ref))   # bounded_act == 'True'

    z_ref[...] = z.astype(z_ref.dtype)
    a_ref[...] = a.astype(a_ref.dtype)


_WEIGHT_ORDER = ("we1", "be1", "we2", "be2", "we3", "be3",
                 "wi1a", "wi1b", "bi1", "wi2", "bi2", "wi3", "bi3")


def deterministic_in_forward(o, o_next, kp, *, z_dim, a_dim,
                             scale=2.0, max_tile_m=256):
    """Calls the Pallas kernel. o, o_next: [B, o_dim] float32; kp = pack_params()."""
    B, o_dim = o.shape
    h_dim = kp["we1"].shape[1]    # lane-padded hidden width
    ZP = kp["we3"].shape[1]       # lane-padded z width
    AP = kp["wi3"].shape[1]       # lane-padded a width

    # Batch padding / tiling: sublane-aligned tiles, capped at max_tile_m.
    Bp = _round_up(max(B, 8), 8)
    tile_m = min(Bp, max_tile_m)
    Bp = _round_up(Bp, tile_m)
    if Bp != B:
        pad = ((0, Bp - B), (0, 0))
        o = jnp.pad(o, pad)
        o_next = jnp.pad(o_next, pad)
    nb = Bp // tile_m

    kernel = functools.partial(_det_in_kernel, float(scale))

    weights = [kp[k] for k in _WEIGHT_ORDER]

    def _resident(w):
        # Full-array block, constant index map -> stays VMEM-resident over the grid.
        return pl.BlockSpec(w.shape, lambda i, _nd=w.ndim: (0,) * _nd)

    in_specs = ([pl.BlockSpec((tile_m, o_dim), lambda i: (i, 0)),
                 pl.BlockSpec((tile_m, o_dim), lambda i: (i, 0))]
                + [_resident(w) for w in weights])
    out_specs = (pl.BlockSpec((tile_m, ZP), lambda i: (i, 0)),
                 pl.BlockSpec((tile_m, AP), lambda i: (i, 0)))

    flops = (2 * (2 * Bp) * (o_dim * h_dim + h_dim * h_dim + h_dim * ZP)
             + 2 * Bp * (2 * ZP * h_dim + h_dim * h_dim + h_dim * AP))
    bytes_accessed = (2 * Bp * o_dim * 4 + Bp * (ZP + AP) * 4
                      + sum(int(w.size) * w.dtype.itemsize for w in weights))
    cost = pl.CostEstimate(flops=int(flops),
                           transcendentals=int(Bp * AP),
                           bytes_accessed=int(bytes_accessed))

    z_pad, a_pad = pl.pallas_call(
        kernel,
        grid=(nb,),
        in_specs=in_specs,
        out_specs=out_specs,
        out_shape=(jax.ShapeDtypeStruct((Bp, ZP), jnp.float32),
                   jax.ShapeDtypeStruct((Bp, AP), jnp.float32)),
        scratch_shapes=[pltpu.VMEM((2 * tile_m, o_dim), jnp.bfloat16)],
        compiler_params=pltpu.CompilerParams(
            dimension_semantics=("parallel",)),
        cost_estimate=cost,
    )(o, o_next, *weights)

    return z_pad[:B, :z_dim], a_pad[:B, :a_dim]


def init_params(key, o_dim, z_dim, h_dim, a_dim):
    """PyTorch-default-style init; weights stored as [in, out], biases [1, out], f32."""
    def linear(k, fan_in, fan_out):
        kw, kb = jax.random.split(k)
        bound = 1.0 / jnp.sqrt(jnp.float32(fan_in))
        w = jax.random.uniform(kw, (fan_in, fan_out), jnp.float32, -bound, bound)
        b = jax.random.uniform(kb, (1, fan_out), jnp.float32, -bound, bound)
        return w, b

    keys = jax.random.split(key, 6)
    we1, be1 = linear(keys[0], o_dim, h_dim)
    we2, be2 = linear(keys[1], h_dim, h_dim)
    we3, be3 = linear(keys[2], h_dim, z_dim)
    wi1, bi1 = linear(keys[3], 2 * z_dim, h_dim)   # acts on concat(z, z_next)
    wi2, bi2 = linear(keys[4], h_dim, h_dim)
    wi3, bi3 = linear(keys[5], h_dim, a_dim)

    return dict(
        we1=we1, be1=be1, we2=we2, be2=be2, we3=we3, be3=be3,
        wi1a=wi1[:z_dim], wi1b=wi1[z_dim:], bi1=bi1,
        wi2=wi2, bi2=bi2, wi3=wi3, bi3=bi3,
    )


def pack_params(params, *, lane=128, weight_dtype=jnp.bfloat16):
    """One-time kernel packing: zero-pad h/z/a dims to multiples of 128 lanes,
    cast weights to bf16.

    Padded weight rows/cols and bias lanes are zero, so padded lanes carry
    ReLU(0)=0 through the network and contribute exactly 0 downstream.
    Biases stay f32 (elementwise math is f32, v5e-safe).
    """
    h_dim = params["we1"].shape[1]
    z_dim = params["we3"].shape[1]
    a_dim = params["wi3"].shape[1]
    HP = _round_up(h_dim, lane)
    ZP = _round_up(z_dim, lane)
    AP = _round_up(a_dim, lane)

    def pad2(x, rows, cols):
        return jnp.pad(x, ((0, rows - x.shape[0]), (0, cols - x.shape[1])))

    wd = weight_dtype
    return dict(
        we1=pad2(params["we1"], params["we1"].shape[0], HP).astype(wd),
        be1=pad2(params["be1"], 1, HP),
        we2=pad2(params["we2"], HP, HP).astype(wd),
        be2=pad2(params["be2"], 1, HP),
        we3=pad2(params["we3"], HP, ZP).astype(wd),
        be3=pad2(params["be3"], 1, ZP),
        wi1a=pad2(params["wi1a"], ZP, HP).astype(wd),
        wi1b=pad2(params["wi1b"], ZP, HP).astype(wd),
        bi1=pad2(params["bi1"], 1, HP),
        wi2=pad2(params["wi2"], HP, HP).astype(wd),
        bi2=pad2(params["bi2"], 1, HP),
        wi3=pad2(params["wi3"], HP, AP).astype(wd),
        bi3=pad2(params["bi3"], 1, AP),
    )


def reference_forward(o, o_next, params, *, scale=2.0):
    """Pure-JAX f32 reference mirroring the PyTorch forward (module semantics)."""
    def encode(x):
        h = jax.nn.relu(x @ params["we1"] + params["be1"])
        h = jax.nn.relu(h @ params["we2"] + params["be2"])
        return h @ params["we3"] + params["be3"]

    z = encode(o)
    z_next = encode(o_next)
    cat = jnp.concatenate([z, z_next], axis=-1)
    w1 = jnp.concatenate([params["wi1a"], params["wi1b"]], axis=0)
    h = jax.nn.relu(cat @ w1 + params["bi1"])
    h = jax.nn.relu(h @ params["wi2"] + params["bi2"])
    a = scale * jnp.tanh(h @ params["wi3"] + params["bi3"])
    return z, a


def reference_forward_kernel_math(o, o_next, kp, *, z_dim, a_dim, scale=2.0):
    """Pure-JAX mirror of the exact kernel math (bf16 operands, f32 accumulation)."""
    def mm(x, w):
        return jnp.dot(x.astype(jnp.bfloat16), w, preferred_element_type=jnp.float32)

    def enc(x):
        h = jnp.maximum(mm(x, kp["we1"]) + kp["be1"], 0.0)
        h = jnp.maximum(mm(h, kp["we2"]) + kp["be2"], 0.0)
        return mm(h, kp["we3"]) + kp["be3"]

    B = o.shape[0]
    z_all = enc(jnp.concatenate([o, o_next], axis=0))
    z, zn = z_all[:B], z_all[B:]
    h = jnp.maximum(mm(z, kp["wi1a"]) + mm(zn, kp["wi1b"]) + kp["bi1"], 0.0)
    h = jnp.maximum(mm(h, kp["wi2"]) + kp["bi2"], 0.0)
    a = scale * jnp.tanh(mm(h, kp["wi3"]) + kp["bi3"])
    return z[:, :z_dim], a[:, :a_dim]


if __name__ == "__main__":
    # Module defaults: z_dim=20, h_dim=256, a_dim=1, scale=2.0; small batch/o_dim.
    B, O_DIM, Z_DIM, H_DIM, A_DIM = 8, 32, 20, 256, 1
    SCALE = 2.0

    key = jax.random.PRNGKey(0)
    k_o, k_on, k_p = jax.random.split(key, 3)

    o = jax.random.normal(k_o, (B, O_DIM), jnp.float32)
    o_next = jax.random.normal(k_on, (B, O_DIM), jnp.float32)
    params = init_params(k_p, O_DIM, Z_DIM, H_DIM, A_DIM)
    kparams = pack_params(params)

    z, a = deterministic_in_forward(o, o_next, kparams,
                                    z_dim=Z_DIM, a_dim=A_DIM, scale=SCALE)
    jax.block_until_ready((z, a))
    assert z.shape == (B, Z_DIM) and a.shape == (B, A_DIM)

    # Strict check vs a pure-JAX mirror of the exact kernel math.
    z_m, a_m = reference_forward_kernel_math(o, o_next, kparams,
                                             z_dim=Z_DIM, a_dim=A_DIM, scale=SCALE)
    assert jnp.allclose(z, z_m, atol=1e-4, rtol=1e-4)
    assert jnp.allclose(a, a_m, atol=1e-4, rtol=1e-4)

    # Semantic check vs the full-f32 PyTorch-style reference; bf16 matmul
    # operands change results at the ~1e-3 level, hence the looser tolerance.
    z_f, a_f = reference_forward(o, o_next, params, scale=SCALE)
    assert jnp.allclose(z, z_f, atol=3e-2, rtol=3e-2)
    assert jnp.allclose(a, a_f, atol=3e-2, rtol=3e-2)

    print("KERNEL_OK")
</pallas_src>

<mosaic_0001>
module attributes {stable_mosaic.version = 11 : i64} {
  func.func @_det_in_kernel(%arg0: i32, %arg1: memref<8x32xf32, #tpu.memory_space<vmem>>, %arg2: memref<8x32xf32, #tpu.memory_space<vmem>>, %arg3: memref<32x256xbf16, #tpu.memory_space<vmem>>, %arg4: memref<1x256xf32, #tpu.memory_space<vmem>>, %arg5: memref<256x256xbf16, #tpu.memory_space<vmem>>, %arg6: memref<1x256xf32, #tpu.memory_space<vmem>>, %arg7: memref<256x128xbf16, #tpu.memory_space<vmem>>, %arg8: memref<1x128xf32, #tpu.memory_space<vmem>>, %arg9: memref<128x256xbf16, #tpu.memory_space<vmem>>, %arg10: memref<128x256xbf16, #tpu.memory_space<vmem>>, %arg11: memref<1x256xf32, #tpu.memory_space<vmem>>, %arg12: memref<256x256xbf16, #tpu.memory_space<vmem>>, %arg13: memref<1x256xf32, #tpu.memory_space<vmem>>, %arg14: memref<256x128xbf16, #tpu.memory_space<vmem>>, %arg15: memref<1x128xf32, #tpu.memory_space<vmem>>, %arg16: memref<8x128xf32, #tpu.memory_space<vmem>>, %arg17: memref<8x128xf32, #tpu.memory_space<vmem>>, %arg18: memref<16x32xbf16, #tpu.memory_space<vmem>>) attributes {dimension_semantics = [#tpu.dimension_semantics<parallel>], iteration_bounds = array<i64: 1>, scalar_prefetch = 0 : i64, scratch_operands = 1 : i64, tpu.core_type = #tpu.core_type<tc>, window_params = [{transform_indices = @transform_0, window_bounds = array<i64: 8, 32>}, {transform_indices = @transform_1, window_bounds = array<i64: 8, 32>}, {pipeline_mode = #tpu.pipeline_mode<synchronous>, transform_indices = @transform_2, window_bounds = array<i64: 32, 256>}, {pipeline_mode = #tpu.pipeline_mode<synchronous>, transform_indices = @transform_3, window_bounds = array<i64: 1, 256>}, {pipeline_mode = #tpu.pipeline_mode<synchronous>, transform_indices = @transform_4, window_bounds = array<i64: 256, 256>}, {pipeline_mode = #tpu.pipeline_mode<synchronous>, transform_indices = @transform_5, window_bounds = array<i64: 1, 256>}, {pipeline_mode = #tpu.pipeline_mode<synchronous>, transform_indices = @transform_6, window_bounds = array<i64: 256, 128>}, {pipeline_mode = #tpu.pipeline_mode<synchronous>, transform_indices = @transform_7, window_bounds = array<i64: 1, 128>}, {pipeline_mode = #tpu.pipeline_mode<synchronous>, transform_indices = @transform_8, window_bounds = array<i64: 128, 256>}, {pipeline_mode = #tpu.pipeline_mode<synchronous>, transform_indices = @transform_9, window_bounds = array<i64: 128, 256>}, {pipeline_mode = #tpu.pipeline_mode<synchronous>, transform_indices = @transform_10, window_bounds = array<i64: 1, 256>}, {pipeline_mode = #tpu.pipeline_mode<synchronous>, transform_indices = @transform_11, window_bounds = array<i64: 256, 256>}, {pipeline_mode = #tpu.pipeline_mode<synchronous>, transform_indices = @transform_12, window_bounds = array<i64: 1, 256>}, {pipeline_mode = #tpu.pipeline_mode<synchronous>, transform_indices = @transform_13, window_bounds = array<i64: 256, 128>}, {pipeline_mode = #tpu.pipeline_mode<synchronous>, transform_indices = @transform_14, window_bounds = array<i64: 1, 128>}, {transform_indices = @transform_15, window_bounds = array<i64: 8, 128>}, {transform_indices = @transform_16, window_bounds = array<i64: 8, 128>}]} {
    %c0 = arith.constant 0 : index
    %c0_0 = arith.constant 0 : index
    %0 = vector.load %arg1[%c0, %c0_0] : memref<8x32xf32, #tpu.memory_space<vmem>>, vector<8x32xf32>
    %1 = arith.truncf %0 : vector<8x32xf32> to vector<8x32xbf16>
    %c0_1 = arith.constant 0 : index
    %c0_2 = arith.constant 0 : index
    %2 = vector.load %arg18[%c0_1, %c0_2] : memref<16x32xbf16, #tpu.memory_space<vmem>>, vector<8x32xbf16>
    tpu.vector_store %arg18[%c0_1, %c0_2], %1 {strides = array<i32>} : memref<16x32xbf16, #tpu.memory_space<vmem>>, vector<8x32xbf16>,
    %c0_3 = arith.constant 0 : index
    %c0_4 = arith.constant 0 : index
    %3 = vector.load %arg2[%c0_3, %c0_4] : memref<8x32xf32, #tpu.memory_space<vmem>>, vector<8x32xf32>
    %4 = arith.truncf %3 : vector<8x32xf32> to vector<8x32xbf16>
    %c8 = arith.constant 8 : index
    %c0_5 = arith.constant 0 : index
    %5 = vector.load %arg18[%c8, %c0_5] : memref<16x32xbf16, #tpu.memory_space<vmem>>, vector<8x32xbf16>
    tpu.vector_store %arg18[%c8, %c0_5], %4 {strides = array<i32>} : memref<16x32xbf16, #tpu.memory_space<vmem>>, vector<8x32xbf16>,
    %c0_6 = arith.constant 0 : index
    %c0_7 = arith.constant 0 : index
    %6 = vector.load %arg18[%c0_6, %c0_7] : memref<16x32xbf16, #tpu.memory_space<vmem>>, vector<16x32xbf16>
    %c0_8 = arith.constant 0 : index
    %c0_9 = arith.constant 0 : index
    %7 = vector.load %arg3[%c0_8, %c0_9] : memref<32x256xbf16, #tpu.memory_space<vmem>>, vector<32x256xbf16>
    %cst = arith.constant dense<0.000000e+00> : vector<16x256xf32>
    %8 = tpu.matmul %6, %7, %cst {dimension_numbers = #tpu.dot_dimension_numbers<[1], [0], [0], [1], [0, 0, 1, 1], [], []>} : vector<16x32xbf16>, vector<32x256xbf16>, vector<16x256xf32> -> vector<16x256xf32>
    %c0_10 = arith.constant 0 : index
    %c0_11 = arith.constant 0 : index
    %9 = vector.load %arg4[%c0_10, %c0_11] : memref<1x256xf32, #tpu.memory_space<vmem>>, vector<1x256xf32>
    %10 = vector.broadcast %9 : vector<1x256xf32> to vector<16x256xf32>
    %11 = arith.addf %8, %10 : vector<16x256xf32>
    %cst_12 = arith.constant 0.000000e+00 : f32
    %12 = vector.broadcast %cst_12 : f32 to vector<16x256xf32>
    %13 = arith.maximumf %11, %12 : vector<16x256xf32>
    %14 = arith.truncf %13 : vector<16x256xf32> to vector<16x256xbf16>
    %c0_13 = arith.constant 0 : index
    %c0_14 = arith.constant 0 : index
    %15 = vector.load %arg5[%c0_13, %c0_14] : memref<256x256xbf16, #tpu.memory_space<vmem>>, vector<256x256xbf16>
    %cst_15 = arith.constant dense<0.000000e+00> : vector<16x256xf32>
    %16 = tpu.matmul %14, %15, %cst_15 {dimension_numbers = #tpu.dot_dimension_numbers<[1], [0], [0], [1], [0, 0, 1, 1], [], []>} : vector<16x256xbf16>, vector<256x256xbf16>, vector<16x256xf32> -> vector<16x256xf32>
    %c0_16 = arith.constant 0 : index
    %c0_17 = arith.constant 0 : index
    %17 = vector.load %arg6[%c0_16, %c0_17] : memref<1x256xf32, #tpu.memory_space<vmem>>, vector<1x256xf32>
    %18 = vector.broadcast %17 : vector<1x256xf32> to vector<16x256xf32>
    %19 = arith.addf %16, %18 : vector<16x256xf32>
    %cst_18 = arith.constant 0.000000e+00 : f32
    %20 = vector.broadcast %cst_18 : f32 to vector<16x256xf32>
    %21 = arith.maximumf %19, %20 : vector<16x256xf32>
    %22 = arith.truncf %21 : vector<16x256xf32> to vector<16x256xbf16>
    %c0_19 = arith.constant 0 : index
    %c0_20 = arith.constant 0 : index
    %23 = vector.load %arg7[%c0_19, %c0_20] : memref<256x128xbf16, #tpu.memory_space<vmem>>, vector<256x128xbf16>
    %cst_21 = arith.constant dense<0.000000e+00> : vector<16x128xf32>
    %24 = tpu.matmul %22, %23, %cst_21 {dimension_numbers = #tpu.dot_dimension_numbers<[1], [0], [0], [1], [0, 0, 1, 1], [], []>} : vector<16x256xbf16>, vector<256x128xbf16>, vector<16x128xf32> -> vector<16x128xf32>
    %c0_22 = arith.constant 0 : index
    %c0_23 = arith.constant 0 : index
    %25 = vector.load %arg8[%c0_22, %c0_23] : memref<1x128xf32, #tpu.memory_space<vmem>>, vector<1x128xf32>
    %26 = vector.broadcast %25 : vector<1x128xf32> to vector<16x128xf32>
    %27 = arith.addf %24, %26 : vector<16x128xf32>
    %28 = vector.extract_strided_slice %27 {offsets = [0, 0], sizes = [8, 128], strides = [1, 1]} : vector<16x128xf32> to vector<8x128xf32>
    %29 = vector.extract_strided_slice %27 {offsets = [8, 0], sizes = [8, 128], strides = [1, 1]} : vector<16x128xf32> to vector<8x128xf32>
    %30 = arith.truncf %28 : vector<8x128xf32> to vector<8x128xbf16>
    %c0_24 = arith.constant 0 : index
    %c0_25 = arith.constant 0 : index
    %31 = vector.load %arg9[%c0_24, %c0_25] : memref<128x256xbf16, #tpu.memory_space<vmem>>, vector<128x256xbf16>
    %cst_26 = arith.constant dense<0.000000e+00> : vector<8x256xf32>
    %32 = tpu.matmul %30, %31, %cst_26 {dimension_numbers = #tpu.dot_dimension_numbers<[1], [0], [0], [1], [0, 0, 1, 1], [], []>} : vector<8x128xbf16>, vector<128x256xbf16>, vector<8x256xf32> -> vector<8x256xf32>
    %33 = arith.truncf %29 : vector<8x128xf32> to vector<8x128xbf16>
    %c0_27 = arith.constant 0 : index
    %c0_28 = arith.constant 0 : index
    %34 = vector.load %arg10[%c0_27, %c0_28] : memref<128x256xbf16, #tpu.memory_space<vmem>>, vector<128x256xbf16>
    %cst_29 = arith.constant dense<0.000000e+00> : vector<8x256xf32>
    %35 = tpu.matmul %33, %34, %cst_29 {dimension_numbers = #tpu.dot_dimension_numbers<[1], [0], [0], [1], [0, 0, 1, 1], [], []>} : vector<8x128xbf16>, vector<128x256xbf16>, vector<8x256xf32> -> vector<8x256xf32>
    %36 = arith.addf %32, %35 : vector<8x256xf32>
    %c0_30 = arith.constant 0 : index
    %c0_31 = arith.constant 0 : index
    %37 = vector.load %arg11[%c0_30, %c0_31] : memref<1x256xf32, #tpu.memory_space<vmem>>, vector<1x256xf32>
    %38 = vector.broadcast %37 : vector<1x256xf32> to vector<8x256xf32>
    %39 = arith.addf %36, %38 : vector<8x256xf32>
    %cst_32 = arith.constant 0.000000e+00 : f32
    %40 = vector.broadcast %cst_32 : f32 to vector<8x256xf32>
    %41 = arith.maximumf %39, %40 : vector<8x256xf32>
    %42 = arith.truncf %41 : vector<8x256xf32> to vector<8x256xbf16>
    %c0_33 = arith.constant 0 : index
    %c0_34 = arith.constant 0 : index
    %43 = vector.load %arg12[%c0_33, %c0_34] : memref<256x256xbf16, #tpu.memory_space<vmem>>, vector<256x256xbf16>
    %cst_35 = arith.constant dense<0.000000e+00> : vector<8x256xf32>
    %44 = tpu.matmul %42, %43, %cst_35 {dimension_numbers = #tpu.dot_dimension_numbers<[1], [0], [0], [1], [0, 0, 1, 1], [], []>} : vector<8x256xbf16>, vector<256x256xbf16>, vector<8x256xf32> -> vector<8x256xf32>
    %c0_36 = arith.constant 0 : index
    %c0_37 = arith.constant 0 : index
    %45 = vector.load %arg13[%c0_36, %c0_37] : memref<1x256xf32, #tpu.memory_space<vmem>>, vector<1x256xf32>
    %46 = vector.broadcast %45 : vector<1x256xf32> to vector<8x256xf32>
    %47 = arith.addf %44, %46 : vector<8x256xf32>
    %cst_38 = arith.constant 0.000000e+00 : f32
    %48 = vector.broadcast %cst_38 : f32 to vector<8x256xf32>
    %49 = arith.maximumf %47, %48 : vector<8x256xf32>
    %50 = arith.truncf %49 : vector<8x256xf32> to vector<8x256xbf16>
    %c0_39 = arith.constant 0 : index
    %c0_40 = arith.constant 0 : index
    %51 = vector.load %arg14[%c0_39, %c0_40] : memref<256x128xbf16, #tpu.memory_space<vmem>>, vector<256x128xbf16>
    %cst_41 = arith.constant dense<0.000000e+00> : vector<8x128xf32>
    %52 = tpu.matmul %50, %51, %cst_41 {dimension_numbers = #tpu.dot_dimension_numbers<[1], [0], [0], [1], [0, 0, 1, 1], [], []>} : vector<8x256xbf16>, vector<256x128xbf16>, vector<8x128xf32> -> vector<8x128xf32>
    %c0_42 = arith.constant 0 : index
    %c0_43 = arith.constant 0 : index
    %53 = vector.load %arg15[%c0_42, %c0_43] : memref<1x128xf32, #tpu.memory_space<vmem>>, vector<1x128xf32>
    %54 = vector.broadcast %53 : vector<1x128xf32> to vector<8x128xf32>
    %55 = arith.addf %52, %54 : vector<8x128xf32>
    %56 = math.tanh %55 : vector<8x128xf32>
    %cst_44 = arith.constant 2.000000e+00 : f32
    %57 = vector.broadcast %cst_44 : f32 to vector<8x128xf32>
    %58 = arith.mulf %57, %56 : vector<8x128xf32>
    %c0_45 = arith.constant 0 : index
    %c0_46 = arith.constant 0 : index
    %59 = vector.load %arg16[%c0_45, %c0_46] : memref<8x128xf32, #tpu.memory_space<vmem>>, vector<8x128xf32>
    tpu.vector_store %arg16[%c0_45, %c0_46], %28 {strides = array<i32>} : memref<8x128xf32, #tpu.memory_space<vmem>>, vector<8x128xf32>,
    %c0_47 = arith.constant 0 : index
    %c0_48 = arith.constant 0 : index
    %60 = vector.load %arg17[%c0_47, %c0_48] : memref<8x128xf32, #tpu.memory_space<vmem>>, vector<8x128xf32>
    tpu.vector_store %arg17[%c0_47, %c0_48], %58 {strides = array<i32>} : memref<8x128xf32, #tpu.memory_space<vmem>>, vector<8x128xf32>,
    return
  }
  func.func @transform_0(%arg0: i32) -> (i32, i32) {
    %c0_i32 = arith.constant 0 : i32
    %c0_i32_0 = arith.constant 0 : i32
    return %arg0, %c0_i32 : i32, i32
  }
  func.func @transform_1(%arg0: i32) -> (i32, i32) {
    %c0_i32 = arith.constant 0 : i32
    %c0_i32_0 = arith.constant 0 : i32
    return %arg0, %c0_i32 : i32, i32
  }
  func.func @transform_2(%arg0: i32) -> (i32, i32) {
    %c0_i32 = arith.constant 0 : i32
    %c0_i32_0 = arith.constant 0 : i32
    %c0_i32_1 = arith.constant 0 : i32
    return %c0_i32, %c0_i32_0 : i32, i32
  }
  func.func @transform_3(%arg0: i32) -> (i32, i32) {
    %c0_i32 = arith.constant 0 : i32
    %c0_i32_0 = arith.constant 0 : i32
    %c0_i32_1 = arith.constant 0 : i32
    return %c0_i32, %c0_i32_0 : i32, i32
  }
  func.func @transform_4(%arg0: i32) -> (i32, i32) {
    %c0_i32 = arith.constant 0 : i32
    %c0_i32_0 = arith.constant 0 : i32
    %c0_i32_1 = arith.constant 0 : i32
    return %c0_i32, %c0_i32_0 : i32, i32
  }
  func.func @transform_5(%arg0: i32) -> (i32, i32) {
    %c0_i32 = arith.constant 0 : i32
    %c0_i32_0 = arith.constant 0 : i32
    %c0_i32_1 = arith.constant 0 : i32
    return %c0_i32, %c0_i32_0 : i32, i32
  }
  func.func @transform_6(%arg0: i32) -> (i32, i32) {
    %c0_i32 = arith.constant 0 : i32
    %c0_i32_0 = arith.constant 0 : i32
    %c0_i32_1 = arith.constant 0 : i32
    return %c0_i32, %c0_i32_0 : i32, i32
  }
  func.func @transform_7(%arg0: i32) -> (i32, i32) {
    %c0_i32 = arith.constant 0 : i32
    %c0_i32_0 = arith.constant 0 : i32
    %c0_i32_1 = arith.constant 0 : i32
    return %c0_i32, %c0_i32_0 : i32, i32
  }
  func.func @transform_8(%arg0: i32) -> (i32, i32) {
    %c0_i32 = arith.constant 0 : i32
    %c0_i32_0 = arith.constant 0 : i32
    %c0_i32_1 = arith.constant 0 : i32
    return %c0_i32, %c0_i32_0 : i32, i32
  }
  func.func @transform_9(%arg0: i32) -> (i32, i32) {
    %c0_i32 = arith.constant 0 : i32
    %c0_i32_0 = arith.constant 0 : i32
    %c0_i32_1 = arith.constant 0 : i32
    return %c0_i32, %c0_i32_0 : i32, i32
  }
  func.func @transform_10(%arg0: i32) -> (i32, i32) {
    %c0_i32 = arith.constant 0 : i32
    %c0_i32_0 = arith.constant 0 : i32
    %c0_i32_1 = arith.constant 0 : i32
    return %c0_i32, %c0_i32_0 : i32, i32
  }
  func.func @transform_11(%arg0: i32) -> (i32, i32) {
    %c0_i32 = arith.constant 0 : i32
    %c0_i32_0 = arith.constant 0 : i32
    %c0_i32_1 = arith.constant 0 : i32
    return %c0_i32, %c0_i32_0 : i32, i32
  }
  func.func @transform_12(%arg0: i32) -> (i32, i32) {
    %c0_i32 = arith.constant 0 : i32
    %c0_i32_0 = arith.constant 0 : i32
    %c0_i32_1 = arith.constant 0 : i32
    return %c0_i32, %c0_i32_0 : i32, i32
  }
  func.func @transform_13(%arg0: i32) -> (i32, i32) {
    %c0_i32 = arith.constant 0 : i32
    %c0_i32_0 = arith.constant 0 : i32
    %c0_i32_1 = arith.constant 0 : i32
    return %c0_i32, %c0_i32_0 : i32, i32
  }
  func.func @transform_14(%arg0: i32) -> (i32, i32) {
    %c0_i32 = arith.constant 0 : i32
    %c0_i32_0 = arith.constant 0 : i32
    %c0_i32_1 = arith.constant 0 : i32
    return %c0_i32, %c0_i32_0 : i32, i32
  }
  func.func @transform_15(%arg0: i32) -> (i32, i32) {
    %c0_i32 = arith.constant 0 : i32
    %c0_i32_0 = arith.constant 0 : i32
    return %arg0, %c0_i32 : i32, i32
  }
  func.func @transform_16(%arg0: i32) -> (i32, i32) {
    %c0_i32 = arith.constant 0 : i32
    %c0_i32_0 = arith.constant 0 : i32
    return %arg0, %c0_i32 : i32, i32
  }
}

</mosaic_0001>

<bundles_post_ra>
// kernel: tpu_custom_call.1
= control target key start
LH: loop header
LB: loop body
LE: loop exit
PB: predicated region body
PF: predicated region fallthrough
CT: control target
= control target key end

     0   :  { %s2581_s0 = inlined_call_operand.hbm [shape: f32[8,32], index: 0, kind: input, shape index: {}]   ;;  %s2582_s1 = inlined_call_operand.hbm [shape: f32[8,32], index: 1, kind: input, shape index: {}]   ;;  %s2583_s2 = inlined_call_operand.hbm [shape: bf16[32,256], index: 2, kind: input, shape index: {}]   ;;  %s2584_s3 = inlined_call_operand.vmem [shape: f32[1,256], index: 3, kind: input, shape index: {}]   ;;  %s2585_s4 = inlined_call_operand.hbm [shape: bf16[256,256], index: 4, kind: input, shape index: {}]   ;;  %s2586_s5 = inlined_call_operand.vmem [shape: f32[1,256], index: 5, kind: input, shape index: {}]   ;;  %s2587_s6 = inlined_call_operand.hbm [shape: bf16[256,128], index: 6, kind: input, shape index: {}]   ;;  %s2588_s7 = inlined_call_operand.hbm [shape: f32[1,128], index: 7, kind: input, shape index: {}]   ;;  %s2589_s8 = inlined_call_operand.hbm [shape: bf16[128,256], index: 8, kind: input, shape index: {}]   ;;  %s2590_s9 = inlined_call_operand.hbm [shape: bf16[128,256], index: 9, kind: input, shape index: {}]   ;;  %s2591_s10 = inlined_call_operand.vmem [shape: f32[1,256], index: 10, kind: input, shape index: {}]   ;;  %s2592_s11 = inlined_call_operand.hbm [shape: bf16[256,256], index: 11, kind: input, shape index: {}]   ;;  %s2593_s12 = inlined_call_operand.vmem [shape: f32[1,256], index: 12, kind: input, shape index: {}]   ;;  %s2594_s13 = inlined_call_operand.hbm [shape: bf16[256,128], index: 13, kind: input, shape index: {}]   ;;  %s2595_s14 = inlined_call_operand.vmem [shape: f32[1,128], index: 14, kind: input, shape index: {}]   ;;  %s2596_s15 = inlined_call_operand.hbm [shape: f32[8,128], index: 15, kind: output, shape index: {0}]   ;;  %s2597_s16 = inlined_call_operand.hbm [shape: f32[8,128], index: 16, kind: output, shape index: {1}]  }
   0x1   :  { %2598 = sst [smem:[#allocation31_spill]] %s2581_s0 }
   0x2   :  { %22 = vsyncpa [#allocation4], 0 }
   0x3   :  { %23 = vsyncpa [#allocation7], 0 }
   0x4   :  { %24 = vsyncpa [#allocation10], 0 }
   0x5   :  { %25 = vsyncpa [#allocation13], 0 }
   0x6   :  { %26 = vsyncpa [#allocation16], 0 }
   0x7   :  { %27 = vsyncpa [#allocation19], 0 }
   0x8   :  { %28 = vsyncpa [#allocation5], 0  ;;  %s46_s23 = sshll.u32 %s2582_s1, 4  ;;  %s47_s23 = int_to_ptr.hbm [resolvable:$true] %s46_s23 }
   0x9   :  { %29 = vsyncpa [#allocation22], 0  ;;  %s2410_s24 = smov [#allocation6]   ;;  %s71_s28 = sshll.u32 %s2585_s4, 4  ;;  %s72_s28 = int_to_ptr.hbm [resolvable:$true] %s71_s28 }
   0xa   :  { %s48_s25 = sshll.u32 %s2410_s24, 4  ;;  %s2411_s29 = smov [#allocation9]   ;;  %s49_s25 = int_to_ptr.vmem [resolvable:$true] %s48_s25 }
   0xb   :  { %51 = dma.hbm_to_vmem [thread:$0]  %s47_s23, 128, %s49_s25, [#allocation7]  }
   0xc   :  { %s73_s30 = sshll.u32 %s2411_s29, 4  ;;  %s100_s18 = sshll.u32 %s2588_s7, 4  ;;  %s74_s30 = int_to_ptr.vmem [resolvable:$true] %s73_s30  ;;  %s101_s18 = int_to_ptr.hbm [resolvable:$true] %s100_s18 }
   0xd   :  { %s2412_s1 = smov 128   ;;  %s2413_s19 = smov 8  }
   0xe   :  { %79 = dma.hbm_to_vmem [thread:$0]  %s72_s28, 4096, %s74_s30, [#allocation10], %s2412_s1, %s2412_s1, %s2413_s19  }
   0xf   :  { %s123_s22 = sshll.u32 %s2590_s9, 4  ;;  %s2414_s4 = smov [#allocation12]   ;;  %s124_s22 = int_to_ptr.hbm [resolvable:$true] %s123_s22 }
  0x10   :  { %s102_s23 = sshll.u32 %s2414_s4, 4  ;;  %s2415_s24 = smov [#allocation15]   ;;  %s103_s23 = int_to_ptr.vmem [resolvable:$true] %s102_s23 }
  0x11   :  { %105 = dma.hbm_to_vmem [thread:$0]  %s101_s18, 16, %s103_s23, [#allocation13]  }
  0x12   :  { %s125_s25 = sshll.u32 %s2415_s24, 4  ;;  %s2599_s27 = sld [smem:[#allocation31_spill]]  ;;  %s126_s25 = int_to_ptr.vmem [resolvable:$true] %s125_s25 }
  0x13   :  { %131 = dma.hbm_to_vmem [thread:$0]  %s124_s22, 2048, %s126_s25, [#allocation16], %s2412_s1, %s2412_s1, %s2413_s19  }
  0x14   :  { %s56_s9 = sshll.u32 %s2583_s2, 4  ;;  %s2416_s0 = smov [#allocation3]   ;;  %s57_s9 = int_to_ptr.hbm [resolvable:$true] %s56_s9 }
  0x15   :  { %s37_s17 = sshll.u32 %s2416_s0, 4  ;;  %s2417_s18 = smov [#allocation8]   ;;  %s38_s17 = int_to_ptr.vmem [resolvable:$true] %s37_s17 }
  0x16   :  { %s58_s20 = sshll.u32 %s2417_s18, 4  ;;  %s86_s23 = sshll.u32 %s2587_s6, 4  ;;  %s59_s20 = int_to_ptr.vmem [resolvable:$true] %s58_s20  ;;  %s87_s23 = int_to_ptr.hbm [resolvable:$true] %s86_s23 }
  0x17   :  { %64 = dma.hbm_to_vmem [thread:$0]  %s57_s9, 512, %s59_s20, [#allocation7], %s2412_s1, %s2412_s1, %s2413_s19  }
  0x18   :  { %s35_s29 = sshll.u32 %s2599_s27, 4  ;;  %s2418_s22 = smov [#allocation11]   ;;  %s36_s29 = int_to_ptr.hbm [resolvable:$true] %s35_s29 }
  0x19   :  { %40 = dma.hbm_to_vmem [thread:$0]  %s36_s29, 128, %s38_s17, [#allocation4]  }
  0x1a   :  { %s88_s24 = sshll.u32 %s2418_s22, 4  ;;  %s110_s7 = sshll.u32 %s2589_s8, 4  ;;  %s89_s24 = int_to_ptr.vmem [resolvable:$true] %s88_s24  ;;  %s111_s7 = int_to_ptr.hbm [resolvable:$true] %s110_s7 }
  0x1b   :  { %s2419_s26 = smov 64   ;;  %s2420_s27 = smov 4  }
  0x1c   :  { %94 = dma.hbm_to_vmem [thread:$0]  %s87_s23, 2048, %s89_s24, [#allocation10], %s2419_s26, %s2419_s26, %s2420_s27  }
  0x1d   :  { %s2421_s29 = smov [#allocation14]   ;;  %s138_s0 = sshll.u32 %s2592_s11, 4  ;;  %s139_s0 = int_to_ptr.hbm [resolvable:$true] %s138_s0 }
  0x1e   :  { %s112_s28 = sshll.u32 %s2421_s29, 4  ;;  %s153_s8 = sshll.u32 %s2594_s13, 4  ;;  %s113_s28 = int_to_ptr.vmem [resolvable:$true] %s112_s28  ;;  %s154_s8 = int_to_ptr.hbm [resolvable:$true] %s153_s8 }
  0x1f   :  { %118 = dma.hbm_to_vmem [thread:$0]  %s111_s7, 2048, %s113_s28, [#allocation13], %s2412_s1, %s2412_s1, %s2413_s19  }
  0x20   :  { %s2422_s18 = smov [#allocation17]   ;;  %s2423_s21 = smov [#allocation18]  }
  0x21   :  { %s140_s20 = sshll.u32 %s2422_s18, 4  ;;  %s155_s11 = sshll.u32 %s2423_s21, 4  ;;  %s141_s20 = int_to_ptr.vmem [resolvable:$true] %s140_s20  ;;  %s156_s11 = int_to_ptr.vmem [resolvable:$true] %s155_s11 }
  0x22   :  { %146 = dma.hbm_to_vmem [thread:$0]  %s139_s0, 4096, %s141_s20, [#allocation16], %s2412_s1, %s2412_s1, %s2413_s19  }
  0x23   :  { %161 = dma.hbm_to_vmem [thread:$0]  %s154_s8, 2048, %s156_s11, [#allocation19], %s2419_s26, %s2419_s26, %s2420_s27  }
  0x24   :  { %2394 = dma.done.wait [#allocation4], 128  }
  0x25   :  { %2395 = vsyncadd [#allocation4], 4294967168 }
  0x26   :  { %2396 = dma.done.wait [#allocation7], 640  }
  0x27   :  { %2397 = vsyncadd [#allocation7], 4294966656 }
  0x28   :  { %2398 = dma.done.wait [#allocation10], 6144  }
  0x29   :  { %2399 = vsyncadd [#allocation10], 4294961152 }
  0x2a   :  { %2400 = dma.done.wait [#allocation13], 2064  }
  0x2b   :  { %2401 = vsyncadd [#allocation13], 4294965232 }
  0x2c   :  { %2402 = dma.done.wait [#allocation16], 6144  }
  0x2d   :  { %2403 = vsyncadd [#allocation16], 4294961152 }
  0x2e   :  { %2404 = dma.done.wait [#allocation19], 2048  }
  0x2f   :  { %2405 = vsyncadd [#allocation19], 4294965248  ;;  %v1433_v0 = vld [vmem:[#allocation8 + $0x10] sm:$0xf]  ;;  %v1957_v1 = vld [vmem:[#allocation8 + $0x14] sm:$0xf0] }
  0x30   :  { %v1956_v2 = vld [vmem:[#allocation8 + $0x14] sm:$0xf]  ;;  %v1434_v3 = vor.u32 %v1957_v1, %v1433_v0  ;;  %v1435_v4 = vld [vmem:[#allocation8 + $0x18] sm:$0xf0]  ;;  %v1425_v5 = vld [vmem:[#allocation8] sm:$0xf] }
  0x31   :  { %v1955_v6 = vld [vmem:[#allocation8 + $0x4] sm:$0xf0]  ;;  %v1438_v7 = vor.u32 %v1956_v2, %v1435_v4  ;;  %v1954_v8 = vld [vmem:[#allocation8 + $0x4] sm:$0xf]  ;;  %v1427_v9 = vld [vmem:[#allocation8 + $0x8] sm:$0xf0] }
  0x32   :  { %v205_v10 = vld [vmem:[#allocation3] sm:$0xff]  ;;  %vm207_vm0 = vcmask 257024   ;;  %259 = vmatpush.bf16.msra.mxu0 %v1434_v3  ;;  %v1426_v11 = vor.u32 %v1955_v6, %v1425_v5  ;;  %v209_v13 = vld [vmem:[#allocation6] sm:$0xff]  ;;  %v1430_v16 = vor.u32 %v1954_v8, %v1427_v9  ;;  %vm249_vm1 = vcmask 261120   ;;  %v1491_v27 = vld [vmem:[#allocation9 + $0x60] sm:$0xf] }
  0x33   :  { %v206_v12 = vpack.c.bf16 %v205_v10, %v205_v10  ;;  %v1499_v14 = vld [vmem:[#allocation9 + $0x70] sm:$0xf]  ;;  %v1973_v15 = vld [vmem:[#allocation9 + $0x74] sm:$0xf0]  ;;  %273 = vmatpush.bf16.msra.mxu1 %v1438_v7  ;;  %v210_v17 = vpack.c.bf16 %v209_v13, %v209_v13  ;;  %v1972_v21 = vld [vmem:[#allocation9 + $0x74] sm:$0xf] }
  0x34   :  { %v1500_v18 = vor.u32 %v1973_v15, %v1499_v14  ;;  %v1563_v19 = vld [vmem:[#allocation9 + $0xf0] sm:$0xf]  ;;  %v1989_v20 = vld [vmem:[#allocation9 + $0xf4] sm:$0xf0]  ;;  %v1501_v23 = vld [vmem:[#allocation9 + $0x78] sm:$0xf0] }
  0x35   :  { %208 = vst.msk [vmem:[#allocation2] sm:$0xf] %vm207_vm0, %v206_v12  ;;  %v1564_v22 = vor.u32 %v1989_v20, %v1563_v19  ;;  %v1988_v24 = vld [vmem:[#allocation9 + $0xf4] sm:$0xf]  ;;  %v1504_v25 = vor.u32 %v1972_v21, %v1501_v23  ;;  %v1565_v26 = vld [vmem:[#allocation9 + $0xf8] sm:$0xf0] }
  0x36   :  { %211 = vst.msk [vmem:[#allocation2 + $0x4] sm:$0xf] %vm207_vm0, %v210_v17  ;;  %485 = vmatpush.bf16.msra.mxu2 %v1500_v18  ;;  %260 = vmatpush.bf16.msra.mxu0 %v1426_v11  ;;  %v1568_v28 = vor.u32 %v1988_v24, %v1565_v26  ;;  %v1971_v29 = vld [vmem:[#allocation9 + $0x64] sm:$0xf0]  ;;  %v1555_v30 = vld [vmem:[#allocation9 + $0xe0] sm:$0xf] }
  0x37   :  { %499 = vmatpush.bf16.msra.mxu3 %v1564_v22  ;;  %v1987_v31 = vld [vmem:[#allocation9 + $0xe4] sm:$0xf0]  ;;  %274 = vmatpush.bf16.msra.mxu1 %v1430_v16  ;;  %v1492_v32 = vor.u32 %v1971_v29, %v1491_v27  ;;  %v1970_v34 = vld [vmem:[#allocation9 + $0x64] sm:$0xf]  ;;  %v1493_v35 = vld [vmem:[#allocation9 + $0x68] sm:$0xf0] }
  0x38   :  { %v1556_v33 = vor.u32 %v1987_v31, %v1555_v30  ;;  %v1986_v36 = vld [vmem:[#allocation9 + $0xe4] sm:$0xf]  ;;  %v1496_v37 = vor.u32 %v1970_v34, %v1493_v35  ;;  %v1557_v38 = vld [vmem:[#allocation9 + $0xe8] sm:$0xf0]  ;;  %v1483_v39 = vld [vmem:[#allocation9 + $0x50] sm:$0xf] }
  0x39   :  { %v1969_v40 = vld [vmem:[#allocation9 + $0x54] sm:$0xf0]  ;;  %v1560_v41 = vor.u32 %v1986_v36, %v1557_v38  ;;  %v1547_v43 = vld [vmem:[#allocation9 + $0xd0] sm:$0xf]  ;;  %v1968_v45 = vld [vmem:[#allocation9 + $0x54] sm:$0xf] }
  0x3a   :  { %513 = vmatpush.bf16.msrb.mxu0 %v1504_v25  ;;  %486 = vmatpush.bf16.msra.mxu2 %v1492_v32  ;;  %v1484_v42 = vor.u32 %v1969_v40, %v1483_v39  ;;  %v1985_v44 = vld [vmem:[#allocation9 + $0xd4] sm:$0xf0]  ;;  %v1485_v46 = vld [vmem:[#allocation9 + $0x58] sm:$0xf0]  ;;  %v1984_v47 = vld [vmem:[#allocation9 + $0xd4] sm:$0xf] }
  0x3b   :  { %527 = vmatpush.bf16.msrb.mxu1 %v1568_v28  ;;  %500 = vmatpush.bf16.msra.mxu3 %v1556_v33  ;;  %v1549_v48 = vld [vmem:[#allocation9 + $0xd8] sm:$0xf0]  ;;  %v1548_v49 = vor.u32 %v1985_v44, %v1547_v43  ;;  %v1488_v50 = vor.u32 %v1968_v45, %v1485_v46  ;;  %v1475_v51 = vld [vmem:[#allocation9 + $0x40] sm:$0xf]  ;;  %v1967_v52 = vld [vmem:[#allocation9 + $0x44] sm:$0xf0] }
  0x3c   :  { %v1539_v53 = vld [vmem:[#allocation9 + $0xc0] sm:$0xf]  ;;  %v1552_v55 = vor.u32 %v1984_v47, %v1549_v48  ;;  %v1983_v56 = vld [vmem:[#allocation9 + $0xc4] sm:$0xf0]  ;;  %v1966_v57 = vld [vmem:[#allocation9 + $0x44] sm:$0xf]  ;;  %v1476_v58 = vor.u32 %v1967_v52, %v1475_v51 }
  0x3d   :  { %v1953_v54 = vld [vmem:[#allocation2] sm:$0xff]  ;;  %v1982_v60 = vld [vmem:[#allocation9 + $0xc4] sm:$0xf]  ;;  %v1540_v62 = vor.u32 %v1983_v56, %v1539_v53  ;;  %v1467_v1 = vld [vmem:[#allocation9 + $0x30] sm:$0xf]  ;;  %s1388_s25 = sshll.u32 %s2596_s15, 4  ;;  %s1389_s25 = int_to_ptr.hbm [resolvable:$true] %s1388_s25 }
  0x3e   :  { %514 = vmatpush.bf16.msrb.mxu0 %v1496_v37  ;;  %487 = vmatpush.bf16.msra.mxu2 %v1484_v42  ;;  %v1477_v59 = vld [vmem:[#allocation9 + $0x48] sm:$0xf0]  ;;  %v1965_v2 = vld [vmem:[#allocation9 + $0x34] sm:$0xf0]  ;;  %v1531_v3 = vld [vmem:[#allocation9 + $0xb0] sm:$0xf] }
  0x3f   :  { %528 = vmatpush.bf16.msrb.mxu1 %v1560_v41  ;;  %v1541_v61 = vld [vmem:[#allocation9 + $0xc8] sm:$0xf0]  ;;  %1439 = vmatmul.msk.bf16.vlgmr.msra.gmra.mxu0 %vm249_vm1, %v1953_v54  ;;  %v1480_v63 = vor.u32 %v1966_v57, %v1477_v59  ;;  %v1468_v4 = vor.u32 %v1965_v2, %v1467_v1  ;;  %v1981_v5 = vld [vmem:[#allocation9 + $0xb4] sm:$0xf0]  ;;  %v1964_v6 = vld [vmem:[#allocation9 + $0x34] sm:$0xf] }
  0x40   :  { %1440 = vmatmul.msk.bf16.vlgmr.msra.gmra.mxu1 %vm249_vm1, %v1953_v54  ;;  %501 = vmatpush.bf16.msra.mxu3 %v1548_v49  ;;  %v1544_v0 = vor.u32 %v1982_v60, %v1541_v61  ;;  %v1469_v7 = vld [vmem:[#allocation9 + $0x38] sm:$0xf0]  ;;  %v1532_v8 = vor.u32 %v1981_v5, %v1531_v3  ;;  %v1980_v10 = vld [vmem:[#allocation9 + $0xb4] sm:$0xf]  ;;  %v1459_v13 = vld [vmem:[#allocation9 + $0x20] sm:$0xf] }
  0x41   :  { %v1472_v9 = vor.u32 %v1964_v6, %v1469_v7  ;;  %v1533_v11 = vld [vmem:[#allocation9 + $0xb8] sm:$0xf0]  ;;  %v1963_v14 = vld [vmem:[#allocation9 + $0x24] sm:$0xf0]  ;;  %v1523_v16 = vld [vmem:[#allocation9 + $0xa0] sm:$0xf] }
  0x42   :  { %515 = vmatpush.bf16.msrb.mxu0 %v1488_v50  ;;  %488 = vmatpush.bf16.msra.mxu2 %v1476_v58  ;;  %v1536_v12 = vor.u32 %v1980_v10, %v1533_v11  ;;  %v1460_v15 = vor.u32 %v1963_v14, %v1459_v13  ;;  %v1979_v17 = vld [vmem:[#allocation9 + $0xa4] sm:$0xf0]  ;;  %v1962_v18 = vld [vmem:[#allocation9 + $0x24] sm:$0xf]  ;;  %v1461_v20 = vld [vmem:[#allocation9 + $0x28] sm:$0xf0] }
  0x43   :  { %529 = vmatpush.bf16.msrb.mxu1 %v1552_v55  ;;  %v1524_v19 = vor.u32 %v1979_v17, %v1523_v16  ;;  %v1978_v21 = vld [vmem:[#allocation9 + $0xa4] sm:$0xf]  ;;  %v1525_v22 = vld [vmem:[#allocation9 + $0xa8] sm:$0xf0]  ;;  %v1464_v23 = vor.u32 %v1962_v18, %v1461_v20  ;;  %v1451_v25 = vld [vmem:[#allocation9 + $0x10] sm:$0xf] }
  0x44   :  { %502 = vmatpush.bf16.msra.mxu3 %v1540_v62  ;;  %v1528_v24 = vor.u32 %v1978_v21, %v1525_v22  ;;  %v1961_v26 = vld [vmem:[#allocation9 + $0x14] sm:$0xf0]  ;;  %v1515_v27 = vld [vmem:[#allocation9 + $0x90] sm:$0xf]  ;;  %v1960_v30 = vld [vmem:[#allocation9 + $0x14] sm:$0xf] }
  0x45   :  { %v1452_v28 = vor.u32 %v1961_v26, %v1451_v25  ;;  %v1977_v29 = vld [vmem:[#allocation9 + $0x94] sm:$0xf0]  ;;  %v1453_v31 = vld [vmem:[#allocation9 + $0x18] sm:$0xf0]  ;;  %v1976_v34 = vld [vmem:[#allocation9 + $0x94] sm:$0xf] }
  0x46   :  { %516 = vmatpush.bf16.msrb.mxu0 %v1480_v63  ;;  %489 = vmatpush.bf16.msra.mxu2 %v1468_v4  ;;  %v1516_v32 = vor.u32 %v1977_v29, %v1515_v27  ;;  %v1456_v33 = vor.u32 %v1960_v30, %v1453_v31  ;;  %v1517_v35 = vld [vmem:[#allocation9 + $0x98] sm:$0xf0]  ;;  %v1443_v37 = vld [vmem:[#allocation9] sm:$0xf]  ;;  %v1959_v38 = vld [vmem:[#allocation9 + $0x4] sm:$0xf0] }
  0x47   :  { %530 = vmatpush.bf16.msrb.mxu1 %v1544_v0  ;;  %v1520_v36 = vor.u32 %v1976_v34, %v1517_v35  ;;  %v1507_v39 = vld [vmem:[#allocation9 + $0x80] sm:$0xf]  ;;  %v1444_v40 = vor.u32 %v1959_v38, %v1443_v37  ;;  %v1975_v41 = vld [vmem:[#allocation9 + $0x84] sm:$0xf0]  ;;  %v1958_v42 = vld [vmem:[#allocation9 + $0x4] sm:$0xf] }
  0x48   :  { %503 = vmatpush.bf16.msra.mxu3 %v1532_v8  ;;  %v1445_v43 = vld [vmem:[#allocation9 + $0x8] sm:$0xf0]  ;;  %v1508_v44 = vor.u32 %v1975_v41, %v1507_v39  ;;  %v1974_v46 = vld [vmem:[#allocation9 + $0x84] sm:$0xf]  ;;  %v2005_v49 = vld [vmem:[#allocation11 + $0x78] sm:$0xff]  ;;  %s2425_s27 = smov [#allocation21]  }
  0x49   :  { %v1448_v45 = vor.u32 %v1958_v42, %v1445_v43  ;;  %v1509_v47 = vld [vmem:[#allocation9 + $0x88] sm:$0xf0]  ;;  %v1997_v50 = vld [vmem:[#allocation11 + $0x38] sm:$0xff]  ;;  %v2004_v51 = vld [vmem:[#allocation11 + $0x70] sm:$0xff]  ;;  %s1397_s29 = sshll.u32 %s2425_s27, 4  ;;  %s1399_s30 = sshll.u32 %s2597_s16, 4  ;;  %s1398_s29 = int_to_ptr.vmem [resolvable:$true] %s1397_s29  ;;  %s1400_s30 = int_to_ptr.hbm [resolvable:$true] %s1399_s30 }
  0x4a   :  { %517 = vmatpush.bf16.msrb.mxu0 %v1472_v9  ;;  %490 = vmatpush.bf16.msra.mxu2 %v1460_v15  ;;  %v1512_v48 = vor.u32 %v1974_v46, %v1509_v47  ;;  %v1996_v52 = vld [vmem:[#allocation11 + $0x30] sm:$0xff]  ;;  %v2003_v53 = vld [vmem:[#allocation11 + $0x68] sm:$0xff]  ;;  %v2002_v54 = vld [vmem:[#allocation11 + $0x60] sm:$0xff] }
  0x4b   :  { %531 = vmatpush.bf16.msrb.mxu1 %v1536_v12  ;;  %v218_v55 = vld [vmem:[%s2584_s3] sm:$0x3]  ;;  %v2001_v9 = vld [vmem:[#allocation11 + $0x58] sm:$0xff]  ;;  %v1994_v10 = vld [vmem:[#allocation11 + $0x20] sm:$0xff] }
  0x4c   :  { %504 = vmatpush.bf16.msra.mxu3 %v1524_v19  ;;  %v220_v58 = vperm.slane %v218_v55, 0  ;;  %v221_v59 = vperm.slane %v218_v55, 1  ;;  %v1995_v8 = vld [vmem:[#allocation11 + $0x28] sm:$0xff]  ;;  %v2000_v11 = vld [vmem:[#allocation11 + $0x50] sm:$0xff]  ;;  %v1993_v12 = vld [vmem:[#allocation11 + $0x18] sm:$0xff] }
  0x4d   :  { %v1999_v13 = vld [vmem:[#allocation11 + $0x48] sm:$0xff]  ;;  %v1992_v14 = vld [vmem:[#allocation11 + $0x10] sm:$0xff]  ;;  %v1998_v15 = vld [vmem:[#allocation11 + $0x40] sm:$0xff] }
  0x4e   :  { %518 = vmatpush.bf16.msrb.mxu0 %v1464_v23  ;;  %491 = vmatpush.bf16.msra.mxu2 %v1452_v28  ;;  %v1991_v16 = vld [vmem:[#allocation11 + $0x8] sm:$0xff]  ;;  %v1990_v17 = vld [vmem:[#allocation11] sm:$0xff]  ;;  %v1755_v18 = vld [vmem:[#allocation14 + $0x70] sm:$0xf] }
  0x4f   :  { %532 = vmatpush.bf16.msrb.mxu1 %v1528_v24  ;;  %v2021_v19 = vld [vmem:[#allocation14 + $0x74] sm:$0xf0]  ;;  %v2020_v20 = vld [vmem:[#allocation14 + $0x74] sm:$0xf]  ;;  %v1757_v22 = vld [vmem:[#allocation14 + $0x78] sm:$0xf0] }
  0x50   :  { %505 = vmatpush.bf16.msra.mxu3 %v1516_v32  ;;  %v1756_v21 = vor.u32 %v2021_v19, %v1755_v18  ;;  %v1747_v23 = vld [vmem:[#allocation14 + $0x60] sm:$0xf]  ;;  %v2019_v24 = vld [vmem:[#allocation14 + $0x64] sm:$0xf0]  ;;  %v1760_v25 = vor.u32 %v2020_v20, %v1757_v22  ;;  %v2018_v26 = vld [vmem:[#allocation14 + $0x64] sm:$0xf] }
  0x51   :  { %v1749_v27 = vld [vmem:[#allocation14 + $0x68] sm:$0xf0]  ;;  %v1691_v28 = vld [vmem:[#allocation15 + $0x70] sm:$0xf]  ;;  %v1748_v29 = vor.u32 %v2019_v24, %v1747_v23  ;;  %v2037_v30 = vld [vmem:[#allocation15 + $0x74] sm:$0xf0] }
  0x52   :  { %519 = vmatpush.bf16.msrb.mxu0 %v1456_v33  ;;  %492 = vmatpush.bf16.msra.mxu2 %v1444_v40  ;;  %v2036_v31 = vld [vmem:[#allocation15 + $0x74] sm:$0xf]  ;;  %v1693_v32 = vld [vmem:[#allocation15 + $0x78] sm:$0xf0]  ;;  %v1752_v33 = vor.u32 %v2018_v26, %v1749_v27  ;;  %v1692_v34 = vor.u32 %v2037_v30, %v1691_v28  ;;  %v2017_v37 = vld [vmem:[#allocation14 + $0x54] sm:$0xf0] }
  0x53   :  { %533 = vmatpush.bf16.msrb.mxu1 %v1520_v36  ;;  %v1696_v35 = vor.u32 %v2036_v31, %v1693_v32  ;;  %v1739_v36 = vld [vmem:[#allocation14 + $0x50] sm:$0xf]  ;;  %v2016_v38 = vld [vmem:[#allocation14 + $0x54] sm:$0xf]  ;;  %v1741_v39 = vld [vmem:[#allocation14 + $0x58] sm:$0xf0] }
  0x54   :  { %506 = vmatpush.bf16.msra.mxu3 %v1508_v44  ;;  %v1683_v40 = vld [vmem:[#allocation15 + $0x60] sm:$0xf]  ;;  %v2035_v41 = vld [vmem:[#allocation15 + $0x64] sm:$0xf0]  ;;  %v2034_v43 = vld [vmem:[#allocation15 + $0x64] sm:$0xf]  ;;  %v1740_v46 = vor.u32 %v2017_v37, %v1739_v36 }
  0x55   :  { %v1684_v42 = vor.u32 %v2035_v41, %v1683_v40  ;;  %v1685_v44 = vld [vmem:[#allocation15 + $0x68] sm:$0xf0]  ;;  %v1667_v27 = vld [vmem:[#allocation15 + $0x40] sm:$0xf]  ;;  %v2031_v28 = vld [vmem:[#allocation15 + $0x44] sm:$0xf0] }
  0x56   :  { %520 = vmatpush.bf16.msrb.mxu0 %v1448_v45  ;;  %679 = vmatpush.bf16.msrb.mxu2 %v1997_v50  ;;  %v319_v45 = vld [vmem:[%s2586_s5] sm:$0x3]  ;;  %v1688_v47 = vor.u32 %v2034_v43, %v1685_v44  ;;  %v1744_v50 = vor.u32 %v2016_v38, %v1741_v39  ;;  %v1733_v55 = vld [vmem:[#allocation14 + $0x48] sm:$0xf0]  ;;  %v1668_v30 = vor.u32 %v2031_v28, %v1667_v27  ;;  %v1715_v32 = vld [vmem:[#allocation14 + $0x20] sm:$0xf] }
  0x57   :  { %534 = vmatpush.bf16.msrb.mxu1 %v1512_v48  ;;  %v1731_v48 = vld [vmem:[#allocation14 + $0x40] sm:$0xf]  ;;  %v1669_v31 = vld [vmem:[#allocation15 + $0x48] sm:$0xf0]  ;;  %v2010_v36 = vld [vmem:[#allocation14 + $0x24] sm:$0xf] }
  0x58   :  { %693 = vmatpush.bf16.msrb.mxu3 %v2005_v49  ;;  %v2015_v49 = vld [vmem:[#allocation14 + $0x44] sm:$0xf0]  ;;  %v1717_v37 = vld [vmem:[#allocation14 + $0x28] sm:$0xf0]  ;;  %v1659_v39 = vld [vmem:[#allocation15 + $0x30] sm:$0xf] }
  0x59   :  { %v1720_v38 = vor.u32 %v2010_v36, %v1717_v37  ;;  %v2029_v40 = vld [vmem:[#allocation15 + $0x34] sm:$0xf0]  ;;  %v2028_v41 = vld [vmem:[#allocation15 + $0x34] sm:$0xf]  ;;  %v1661_v43 = vld [vmem:[#allocation15 + $0x38] sm:$0xf0] }
  0x5a   :  { %680 = vmatpush.bf16.msrb.mxu2 %v1996_v52  ;;  %821 = vmatpush.bf16.msra.mxu0 %v1692_v34  ;;  %v2033_v52 = vld [vmem:[#allocation15 + $0x54] sm:$0xf0]  ;;  %v1707_v44 = vld [vmem:[#allocation14 + $0x10] sm:$0xf] }
  0x5b   :  { %834 = vmatpush.bf16.msra.mxu1 %v1696_v35  ;;  %v1867_v37 = vld [vmem:[#allocation17 + $0xd0] sm:$0xf] }
  0x5c   :  { %694 = vmatpush.bf16.msrb.mxu3 %v2004_v51  ;;  %v1675_v51 = vld [vmem:[#allocation15 + $0x50] sm:$0xf] }
  0x5e   :  { %681 = vmatpush.bf16.msrb.mxu2 %v1995_v8  ;;  %822 = vmatpush.bf16.msra.mxu0 %v1684_v42  ;;  %v321_v8 = vperm.slane %v319_v45, 0  ;;  %v1660_v42 = vor.u32 %v2029_v40, %v1659_v39  ;;  %v2048_v39 = vld [vmem:[#allocation17 + $0x54] sm:$0xf] }
  0x5f   :  { %835 = vmatpush.bf16.msra.mxu1 %v1688_v47 }
  0x60   :  { %695 = vmatpush.bf16.msrb.mxu3 %v2003_v53  ;;  %v2032_v53 = vld [vmem:[#allocation15 + $0x54] sm:$0xf] }
  0x62   :  { %682 = vmatpush.bf16.msrb.mxu2 %v1994_v10 }
  0x64   :  { %696 = vmatpush.bf16.msrb.mxu3 %v2002_v54  ;;  %v2014_v54 = vld [vmem:[#allocation14 + $0x44] sm:$0xf] }
  0x66   :  { %683 = vmatpush.bf16.msrb.mxu2 %v1993_v12 }
  0x68   :  { %697 = vmatpush.bf16.msrb.mxu3 %v2001_v9 }
  0x6a   :  { %684 = vmatpush.bf16.msrb.mxu2 %v1992_v14 }
  0x6c   :  { %698 = vmatpush.bf16.msrb.mxu3 %v2000_v11 }
  0x6e   :  { %685 = vmatpush.bf16.msrb.mxu2 %v1991_v16 }
  0x70   :  { %699 = vmatpush.bf16.msrb.mxu3 %v1999_v13 }
  0x72   :  { %686 = vmatpush.bf16.msrb.mxu2 %v1990_v17 }
  0x74   :  { %700 = vmatpush.bf16.msrb.mxu3 %v1998_v15 }
  0xbc   :  { %v262_v56 = vpop.f32.mrf.mxu0 }
  0xbd   :  { %v276_v57 = vpop.f32.mrf.mxu1  ;;  %v263_v60 = vadd.f32 %v262_v56, %v220_v58  ;;  %v1677_v56 = vld [vmem:[#allocation15 + $0x58] sm:$0xf0] }
  0xbe   :  { %v277_v61 = vadd.f32 %v276_v57, %v221_v59 }
  0xbf   :  { %v281_v2 = vmax.f32 %v263_v60, 0.0  ;;  %v1680_v60 = vor.u32 %v2032_v53, %v1677_v56  ;;  %v2026_v53 = vld [vmem:[#allocation15 + $0x24] sm:$0xf]  ;;  %v1699_v56 = vld [vmem:[#allocation14] sm:$0xf] }
  0xc0   :  { %v282_v3 = vmax.f32 %v277_v61, 0.0  ;;  %v322_v61 = vperm.slane %v319_v45, 1  ;;  %v2009_v45 = vld [vmem:[#allocation14 + $0x14] sm:$0xf0] }
  0xc1   :  { %836 = vmatpush.bf16.msra.mxu1 %v1680_v60  ;;  %v1708_v47 = vor.u32 %v2009_v45, %v1707_v44  ;;  %v2006_v60 = vld [vmem:[#allocation14 + $0x4] sm:$0xf] }
  0xc4   :  { %v264_v62 = vpop.f32.mrf.mxu0 }
  0xc5   :  { %v278_v63 = vpop.f32.mrf.mxu1  ;;  %v265_v0 = vadd.f32 %v264_v62, %v220_v58  ;;  %v1732_v62 = vor.u32 %v2015_v49, %v1731_v48  ;;  %v2008_v48 = vld [vmem:[#allocation14 + $0x14] sm:$0xf]  ;;  %v1709_v49 = vld [vmem:[#allocation14 + $0x18] sm:$0xf0] }
  0xc6   :  { %v279_v1 = vadd.f32 %v278_v63, %v221_v59  ;;  %v1676_v59 = vor.u32 %v2033_v52, %v1675_v51  ;;  %v1736_v63 = vor.u32 %v2014_v54, %v1733_v55  ;;  %v1651_v51 = vld [vmem:[#allocation15 + $0x20] sm:$0xf]  ;;  %v2027_v52 = vld [vmem:[#allocation15 + $0x24] sm:$0xf0]  ;;  %v1653_v55 = vld [vmem:[#allocation15 + $0x28] sm:$0xf0] }
  0xc7   :  { %v283_v4 = vmax.f32 %v265_v0, 0.0  ;;  %v1723_v0 = vld [vmem:[#allocation14 + $0x30] sm:$0xf]  ;;  %v1652_v54 = vor.u32 %v2027_v52, %v1651_v51  ;;  %v2046_v51 = vld [vmem:[#allocation17 + $0x44] sm:$0xf] }
  0xc8   :  { %v284_v5 = vmax.f32 %v279_v1, 0.0  ;;  %v2013_v1 = vld [vmem:[#allocation14 + $0x34] sm:$0xf0]  ;;  %823 = vmatpush.bf16.msra.mxu0 %v1676_v59  ;;  %v1797_v52 = vld [vmem:[#allocation17 + $0x48] sm:$0xf0] }
  0xc9   :  { %v285_v6 = vpack.c.bf16 %v283_v4, %v281_v2  ;;  %v2012_v2 = vld [vmem:[#allocation14 + $0x34] sm:$0xf] }
  0xca   :  { %v286_v7 = vpack.c.bf16 %v284_v5, %v282_v3  ;;  %v1725_v3 = vld [vmem:[#allocation14 + $0x38] sm:$0xf0] }
  0xcb   :  { %493 = vmatmul.bf16.vlgmr.msra.gmra.mxu2 %v285_v6  ;;  %521 = vmatmul.bf16.vlgmr.msrb.gmra.mxu0 %v285_v6  ;;  %v1728_v9 = vor.u32 %v2012_v2, %v1725_v3  ;;  %v1645_v3 = vld [vmem:[#allocation15 + $0x18] sm:$0xf0] }
  0xcc   :  { %507 = vmatmul.bf16.vlgmr.msra.gmra.mxu3 %v286_v7  ;;  %535 = vmatmul.bf16.vlgmr.msrb.gmra.mxu1 %v286_v7  ;;  %v1724_v7 = vor.u32 %v2013_v1, %v1723_v0  ;;  %v2025_v0 = vld [vmem:[#allocation15 + $0x14] sm:$0xf0]  ;;  %v2024_v1 = vld [vmem:[#allocation15 + $0x14] sm:$0xf] }
  0xcd   :  { %927 = vmatpush.bf16.msra.mxu2 %v1756_v21  ;;  %940 = vmatpush.bf16.msra.mxu3 %v1760_v25 }
  0xce   :  { %824 = vmatpush.bf16.msra.mxu0 %v1668_v30  ;;  %v1813_v30 = vld [vmem:[#allocation17 + $0x68] sm:$0xf0] }
  0xd1   :  { %928 = vmatpush.bf16.msra.mxu2 %v1748_v29  ;;  %941 = vmatpush.bf16.msra.mxu3 %v1752_v33  ;;  %v2030_v29 = vld [vmem:[#allocation15 + $0x44] sm:$0xf]  ;;  %v2011_v33 = vld [vmem:[#allocation14 + $0x24] sm:$0xf0] }
  0xd2   :  { %v1672_v34 = vor.u32 %v2030_v29, %v1669_v31  ;;  %v1716_v35 = vor.u32 %v2011_v33, %v1715_v32  ;;  %825 = vmatpush.bf16.msra.mxu0 %v1660_v42  ;;  %v2050_v29 = vld [vmem:[#allocation17 + $0x64] sm:$0xf]  ;;  %v1877_v33 = vld [vmem:[#allocation17 + $0xe8] sm:$0xf0]  ;;  %v2064_v42 = vld [vmem:[#allocation17 + $0xd4] sm:$0xf] }
  0xd3   :  { %v2066_v31 = vld [vmem:[#allocation17 + $0xe4] sm:$0xf]  ;;  %v1816_v32 = vor.u32 %v2050_v29, %v1813_v30  ;;  %v1771_v30 = vld [vmem:[#allocation17 + $0x10] sm:$0xf] }
  0xd4   :  { %837 = vmatpush.bf16.msra.mxu1 %v1672_v34  ;;  %v1803_v34 = vld [vmem:[#allocation17 + $0x50] sm:$0xf]  ;;  %v1880_v36 = vor.u32 %v2066_v31, %v1877_v33  ;;  %v2041_v31 = vld [vmem:[#allocation17 + $0x14] sm:$0xf0] }
  0xd5   :  { %929 = vmatpush.bf16.msra.mxu2 %v1740_v46  ;;  %942 = vmatpush.bf16.msra.mxu3 %v1744_v50  ;;  %v1664_v46 = vor.u32 %v2028_v41, %v1661_v43  ;;  %v1712_v50 = vor.u32 %v2008_v48, %v1709_v49  ;;  %v1805_v41 = vld [vmem:[#allocation17 + $0x58] sm:$0xf0]  ;;  %v1859_v48 = vld [vmem:[#allocation17 + $0xc0] sm:$0xf]  ;;  %v1772_v33 = vor.u32 %v2041_v31, %v1771_v30 }
  0xd6   :  { %826 = vmatpush.bf16.msra.mxu0 %v1652_v54  ;;  %v1869_v43 = vld [vmem:[#allocation17 + $0xd8] sm:$0xf0]  ;;  %v1808_v45 = vor.u32 %v2048_v39, %v1805_v41  ;;  %v1861_v54 = vld [vmem:[#allocation17 + $0xc8] sm:$0xf0] }
  0xd7   :  { %v1872_v49 = vor.u32 %v2064_v42, %v1869_v43  ;;  %v1763_v42 = vld [vmem:[#allocation17] sm:$0xf]  ;;  %v2039_v43 = vld [vmem:[#allocation17 + $0x4] sm:$0xf0] }
  0xd8   :  { %838 = vmatpush.bf16.msra.mxu1 %v1664_v46  ;;  %v1795_v46 = vld [vmem:[#allocation17 + $0x40] sm:$0xf] }
  0xd9   :  { %930 = vmatpush.bf16.msra.mxu2 %v1732_v62  ;;  %943 = vmatpush.bf16.msra.mxu3 %v1736_v63  ;;  %v1643_v63 = vld [vmem:[#allocation15 + $0x10] sm:$0xf] }
  0xda   :  { %v1644_v2 = vor.u32 %v2025_v0, %v1643_v63  ;;  %v2044_v63 = vld [vmem:[#allocation17 + $0x34] sm:$0xf]  ;;  %v1789_v0 = vld [vmem:[#allocation17 + $0x38] sm:$0xf0] }
  0xdc   :  { %827 = vmatpush.bf16.msra.mxu0 %v1644_v2  ;;  %v2060_v2 = vld [vmem:[#allocation17 + $0xb4] sm:$0xf] }
  0xdd   :  { %931 = vmatpush.bf16.msra.mxu2 %v1724_v7  ;;  %944 = vmatpush.bf16.msra.mxu3 %v1728_v9  ;;  %v2022_v7 = vld [vmem:[#allocation15 + $0x4] sm:$0xf]  ;;  %v1637_v9 = vld [vmem:[#allocation15 + $0x8] sm:$0xf0] }
  0xe1   :  { %932 = vmatpush.bf16.msra.mxu2 %v1716_v35  ;;  %945 = vmatpush.bf16.msra.mxu3 %v1720_v38  ;;  %v2049_v35 = vld [vmem:[#allocation17 + $0x54] sm:$0xf0] }
  0xe2   :  { %v2065_v38 = vld [vmem:[#allocation17 + $0xd4] sm:$0xf0]  ;;  %v1804_v40 = vor.u32 %v2049_v35, %v1803_v34  ;;  %v2040_v35 = vld [vmem:[#allocation17 + $0x14] sm:$0xf] }
  0xe3   :  { %v1868_v44 = vor.u32 %v2065_v38, %v1867_v37  ;;  %v2057_v34 = vld [vmem:[#allocation17 + $0x94] sm:$0xf0]  ;;  %v1773_v37 = vld [vmem:[#allocation17 + $0x18] sm:$0xf0]  ;;  %v2056_v38 = vld [vmem:[#allocation17 + $0x94] sm:$0xf] }
  0xe4   :  { %v1776_v39 = vor.u32 %v2040_v35, %v1773_v37 }
  0xe5   :  { %933 = vmatpush.bf16.msra.mxu2 %v1708_v47  ;;  %946 = vmatpush.bf16.msra.mxu3 %v1712_v50  ;;  %v2047_v47 = vld [vmem:[#allocation17 + $0x44] sm:$0xf0] }
  0xe6   :  { %v2063_v50 = vld [vmem:[#allocation17 + $0xc4] sm:$0xf0] }
 0x148   :  { %v522_v57 = vpop.f32.mrf.mxu0 }
 0x149   :  { %v536_v58 = vpop.f32.mrf.mxu1  ;;  %v523_v4 = vadd.f32 %v522_v57, %v322_v61  ;;  %v2007_v57 = vld [vmem:[#allocation14 + $0x4] sm:$0xf0] }
 0x14a   :  { %v1700_v59 = vor.u32 %v2007_v57, %v1699_v56  ;;  %v1860_v56 = vor.u32 %v2063_v50, %v1859_v48  ;;  %v1800_v57 = vor.u32 %v2046_v51, %v1797_v52  ;;  %v1765_v48 = vld [vmem:[#allocation17 + $0x8] sm:$0xf0]  ;;  %v2054_v51 = vld [vmem:[#allocation17 + $0x84] sm:$0xf] }
 0x14b   :  { %v537_v11 = vadd.f32 %v536_v58, %v523_v4  ;;  %v1656_v58 = vor.u32 %v2026_v53, %v1653_v55  ;;  %v1648_v4 = vor.u32 %v2024_v1, %v1645_v3  ;;  %v2062_v53 = vld [vmem:[#allocation17 + $0xc4] sm:$0xf]  ;;  %v1796_v55 = vor.u32 %v2047_v47, %v1795_v46  ;;  %v2102_v1 = vld [vmem:[#allocation12] ss:$0 sm:$0xff]  ;;  %v2055_v46 = vld [vmem:[#allocation17 + $0x84] sm:$0xf0] }
 0x14c   :  { %934 = vmatpush.bf16.msra.mxu2 %v1700_v59  ;;  %v2045_v59 = vld [vmem:[#allocation17 + $0x34] sm:$0xf0]  ;;  %v1853_v3 = vld [vmem:[#allocation17 + $0xb8] sm:$0xf0]  ;;  %v2038_v47 = vld [vmem:[#allocation17 + $0x4] sm:$0xf] }
 0x14d   :  { %v542_v16 = vmax.f32 %v537_v11, 0.0  ;;  %839 = vmatpush.bf16.msra.mxu1 %v1656_v58  ;;  %v1819_v11 = vld [vmem:[#allocation17 + $0x70] sm:$0xf]  ;;  %v1768_v50 = vor.u32 %v2038_v47, %v1765_v48  ;;  %v1829_v52 = vld [vmem:[#allocation17 + $0x88] sm:$0xf0] }
 0x14e   :  { %v494_v5 = vpop.f32.mrf.mxu2  ;;  %v1787_v58 = vld [vmem:[#allocation17 + $0x30] sm:$0xf] }
 0x14f   :  { %v508_v6 = vpop.f32.mrf.mxu3  ;;  %v495_v13 = vadd.f32 %v494_v5, %v321_v8  ;;  %v1635_v5 = vld [vmem:[#allocation15] sm:$0xf] }
 0x150   :  { %v524_v10 = vpop.f32.mrf.mxu0 }
 0x151   :  { %v525_v12 = vadd.f32 %v524_v10, %v322_v61  ;;  %v538_v14 = vpop.f32.mrf.mxu1  ;;  %v509_v19 = vadd.f32 %v508_v6, %v495_v13  ;;  %v1701_v61 = vld [vmem:[#allocation14 + $0x8] sm:$0xf0]  ;;  %840 = vmatpush.bf16.msra.mxu1 %v1648_v4  ;;  %v2023_v6 = vld [vmem:[#allocation15 + $0x4] sm:$0xf0]  ;;  %v1640_v10 = vor.u32 %v2022_v7, %v1637_v9  ;;  %v1883_v13 = vld [vmem:[#allocation17 + $0xf0] sm:$0xf]  ;;  %v1788_v4 = vor.u32 %v2045_v59, %v1787_v58 }
 0x152   :  { %v1704_v62 = vor.u32 %v2006_v60, %v1701_v61  ;;  %v1851_v60 = vld [vmem:[#allocation17 + $0xb0] sm:$0xf]  ;;  %v1864_v61 = vor.u32 %v2062_v53, %v1861_v54  ;;  %v1856_v9 = vor.u32 %v2060_v2, %v1853_v3  ;;  %v1832_v53 = vor.u32 %v2054_v51, %v1829_v52  ;;  %v2077_v54 = vld [vmem:[#allocation18 + $0x38] sm:$0xff]  ;;  %v2075_v58 = vld [vmem:[#allocation18 + $0x28] sm:$0xff] }
 0x153   :  { %v539_v15 = vadd.f32 %v538_v14, %v525_v12  ;;  %v541_v24 = vmax.f32 %v509_v19, 0.0  ;;  %v2053_v12 = vld [vmem:[#allocation17 + $0x74] sm:$0xf0]  ;;  %v2083_v59 = vld [vmem:[#allocation18 + $0x68] sm:$0xff] }
 0x154   :  { %947 = vmatpush.bf16.msra.mxu3 %v1704_v62  ;;  %v1820_v14 = vor.u32 %v2053_v12, %v1819_v11  ;;  %v2061_v62 = vld [vmem:[#allocation17 + $0xb4] sm:$0xf0] }
 0x155   :  { %v544_v17 = vmax.f32 %v539_v15, 0.0  ;;  %841 = vmatpush.bf16.msra.mxu1 %v1640_v10  ;;  %v2069_v15 = vld [vmem:[#allocation17 + $0xf4] sm:$0xf0] }
 0x156   :  { %v496_v18 = vpop.f32.mrf.mxu2 }
 0x157   :  { %v497_v20 = vadd.f32 %v496_v18, %v321_v8  ;;  %v546_v21 = vpack.c.bf16 %v544_v17, %v542_v16  ;;  %v510_v22 = vpop.f32.mrf.mxu3  ;;  %v1636_v8 = vor.u32 %v2023_v6, %v1635_v5  ;;  %v2052_v16 = vld [vmem:[#allocation17 + $0x74] sm:$0xf]  ;;  %v1821_v17 = vld [vmem:[#allocation17 + $0x78] sm:$0xf0]  ;;  %v1884_v18 = vor.u32 %v2069_v15, %v1883_v13 }
 0x158   :  { %v1824_v19 = vor.u32 %v2052_v16, %v1821_v17  ;;  %v1852_v5 = vor.u32 %v2061_v62, %v1851_v60  ;;  %v1792_v6 = vor.u32 %v2044_v63, %v1789_v0  ;;  %v2074_v60 = vld [vmem:[#allocation18 + $0x20] sm:$0xff]  ;;  %v2073_v62 = vld [vmem:[#allocation18 + $0x18] sm:$0xff]  ;;  %v2072_v0 = vld [vmem:[#allocation18 + $0x10] sm:$0xff] }
 0x159   :  { %v511_v23 = vadd.f32 %v510_v22, %v497_v20  ;;  %701 = vmatmul.bf16.vlgmr.msrb.gmra.mxu3 %v546_v21  ;;  %828 = vmatpush.bf16.msra.mxu0 %v1636_v8  ;;  %v2068_v20 = vld [vmem:[#allocation17 + $0xf4] sm:$0xf]  ;;  %v1885_v21 = vld [vmem:[#allocation17 + $0xf8] sm:$0xf0]  ;;  %v1811_v22 = vld [vmem:[#allocation17 + $0x60] sm:$0xf] }
 0x15a   :  { %1176 = vmatpush.bf16.msrb.mxu1 %v1884_v18  ;;  %v1779_v18 = vld [vmem:[#allocation17 + $0x20] sm:$0xf]  ;;  %v953_v63 = vld [vmem:[%s2591_s10] sm:$0x3] }
 0x15b   :  { %v543_v25 = vmax.f32 %v511_v23, 0.0  ;;  %v1888_v23 = vor.u32 %v2068_v20, %v1885_v21  ;;  %v1843_v20 = vld [vmem:[#allocation17 + $0xa0] sm:$0xf]  ;;  %v955_v3 = vperm.slane %v953_v63, 0 }
 0x15d   :  { %v545_v26 = vpack.c.bf16 %v543_v25, %v541_v24  ;;  %1163 = vmatpush.bf16.msrb.mxu0 %v1820_v14  ;;  %v2051_v24 = vld [vmem:[#allocation17 + $0x64] sm:$0xf0]  ;;  %v1875_v25 = vld [vmem:[#allocation17 + $0xe0] sm:$0xf]  ;;  %1202 = vmatpush.bf16.msrb.mxu3 %v1888_v23  ;;  %v2042_v23 = vld [vmem:[#allocation17 + $0x24] sm:$0xf] }
 0x15e   :  { %v1812_v27 = vor.u32 %v2051_v24, %v1811_v22  ;;  %v2059_v22 = vld [vmem:[#allocation17 + $0xa4] sm:$0xf0]  ;;  %v1781_v24 = vld [vmem:[#allocation17 + $0x28] sm:$0xf0] }
 0x15f   :  { %687 = vmatmul.bf16.vlgmr.msrb.gmra.mxu2 %v545_v26  ;;  %v2067_v26 = vld [vmem:[#allocation17 + $0xe4] sm:$0xf0] }
 0x160   :  { %1189 = vmatpush.bf16.msrb.mxu2 %v1824_v19  ;;  %v1876_v28 = vor.u32 %v2067_v26, %v1875_v25  ;;  %v2043_v19 = vld [vmem:[#allocation17 + $0x24] sm:$0xf0]  ;;  %v1844_v25 = vor.u32 %v2059_v22, %v1843_v20  ;;  %v1784_v26 = vor.u32 %v2042_v23, %v1781_v24  ;;  %v2070_v22 = vld [vmem:[#allocation18] sm:$0xff] }
 0x161   :  { %1164 = vmatpush.bf16.msrb.mxu0 %v1812_v27  ;;  %1203 = vmatpush.bf16.msrb.mxu3 %v1880_v36  ;;  %v1780_v21 = vor.u32 %v2043_v19, %v1779_v18  ;;  %v2058_v27 = vld [vmem:[#allocation17 + $0xa4] sm:$0xf]  ;;  %v2081_v19 = vld [vmem:[#allocation18 + $0x58] sm:$0xff]  ;;  %v2071_v20 = vld [vmem:[#allocation18 + $0x8] sm:$0xff] }
 0x162   :  { %1177 = vmatpush.bf16.msrb.mxu1 %v1876_v28  ;;  %v1845_v28 = vld [vmem:[#allocation17 + $0xa8] sm:$0xf0]  ;;  %v2078_v24 = vld [vmem:[#allocation18 + $0x40] sm:$0xff] }
 0x163   :  { %v1848_v29 = vor.u32 %v2058_v27, %v1845_v28  ;;  %v2079_v23 = vld [vmem:[#allocation18 + $0x48] sm:$0xff] }
 0x164   :  { %1190 = vmatpush.bf16.msrb.mxu2 %v1816_v32  ;;  %v1835_v32 = vld [vmem:[#allocation17 + $0x90] sm:$0xf] }
 0x165   :  { %1165 = vmatpush.bf16.msrb.mxu0 %v1804_v40  ;;  %1204 = vmatpush.bf16.msrb.mxu3 %v1872_v49  ;;  %v1836_v36 = vor.u32 %v2057_v34, %v1835_v32  ;;  %v1837_v40 = vld [vmem:[#allocation17 + $0x98] sm:$0xf0] }
 0x166   :  { %1178 = vmatpush.bf16.msrb.mxu1 %v1868_v44  ;;  %v1840_v41 = vor.u32 %v2056_v38, %v1837_v40  ;;  %v1827_v44 = vld [vmem:[#allocation17 + $0x80] sm:$0xf] }
 0x167   :  { %v1828_v49 = vor.u32 %v2055_v46, %v1827_v44 }
 0x168   :  { %1191 = vmatpush.bf16.msrb.mxu2 %v1808_v45  ;;  %v1764_v45 = vor.u32 %v2039_v43, %v1763_v42 }
 0x169   :  { %1166 = vmatpush.bf16.msrb.mxu0 %v1796_v55  ;;  %1205 = vmatpush.bf16.msrb.mxu3 %v1864_v61  ;;  %v2085_v55 = vld [vmem:[#allocation18 + $0x78] sm:$0xff]  ;;  %v2082_v61 = vld [vmem:[#allocation18 + $0x60] sm:$0xff] }
 0x16a   :  { %1179 = vmatpush.bf16.msrb.mxu1 %v1860_v56  ;;  %v2076_v56 = vld [vmem:[#allocation18 + $0x30] sm:$0xff] }
 0x16c   :  { %1192 = vmatpush.bf16.msrb.mxu2 %v1800_v57  ;;  %v2084_v57 = vld [vmem:[#allocation18 + $0x70] sm:$0xff] }
 0x16d   :  { %1167 = vmatpush.bf16.msrb.mxu0 %v1788_v4  ;;  %1206 = vmatpush.bf16.msrb.mxu3 %v1856_v9  ;;  %v956_v4 = vperm.slane %v953_v63, 1 }
 0x16e   :  { %1180 = vmatpush.bf16.msrb.mxu1 %v1852_v5 }
 0x170   :  { %1193 = vmatpush.bf16.msrb.mxu2 %v1792_v6 }
 0x171   :  { %1168 = vmatpush.bf16.msrb.mxu0 %v1780_v21  ;;  %1207 = vmatpush.bf16.msrb.mxu3 %v1848_v29  ;;  %v2080_v21 = vld [vmem:[#allocation18 + $0x50] sm:$0xff] }
 0x172   :  { %1181 = vmatpush.bf16.msrb.mxu1 %v1844_v25  ;;  %v997_v25 = vld [vmem:[%s2593_s12] sm:$0x3]  ;;  %s2424_s12 = smov [#allocation20]  }
 0x173   :  { %v1000_v31 = vperm.slane %v997_v25, 1  ;;  %s1386_s22 = sshll.u32 %s2424_s12, 4  ;;  %s1387_s22 = int_to_ptr.vmem [resolvable:$true] %s1386_s22 }
 0x174   :  { %1194 = vmatpush.bf16.msrb.mxu2 %v1784_v26  ;;  %v999_v26 = vperm.slane %v997_v25, 0 }
 0x175   :  { %1169 = vmatpush.bf16.msrb.mxu0 %v1772_v33  ;;  %1208 = vmatpush.bf16.msrb.mxu3 %v1840_v41 }
 0x176   :  { %1182 = vmatpush.bf16.msrb.mxu1 %v1836_v36 }
 0x178   :  { %1195 = vmatpush.bf16.msrb.mxu2 %v1776_v39 }
 0x179   :  { %1170 = vmatpush.bf16.msrb.mxu0 %v1764_v45  ;;  %1209 = vmatpush.bf16.msrb.mxu3 %v1832_v53  ;;  %v2103_v45 = vld [vmem:[%s2595_s14] ss:$0 sm:$0xff] }
 0x17a   :  { %1183 = vmatpush.bf16.msrb.mxu1 %v1828_v49 }
 0x17c   :  { %1196 = vmatpush.bf16.msrb.mxu2 %v1768_v50 }
 0x1dc   :  { %v702_v7 = vpop.f32.mrf.mxu3 }
 0x1e2   :  { %v688_v8 = vpop.f32.mrf.mxu2 }
 0x1e3   :  { %v689_v10 = vadd.f32 %v2102_v1, %v688_v8 }
 0x1e4   :  { %v704_v15 = vpop.f32.mrf.mxu3 }
 0x1e5   :  { %v703_v11 = vadd.f32 %v702_v7, %v689_v10 }
 0x1e7   :  { %v707_v12 = vpack.c.bf16 %v703_v11, %v703_v11  ;;  %1379 = vst [vmem:[#allocation20] sm:$0xff] %v703_v11 }
 0x1e8   :  { %1391 = dma.vmem_to_hbm [thread:$0]  %s1387_s22, 128, %s1389_s25, [#allocation5]  }
 0x1e9   :  { %935 = vmatmul.bf16.vlgmr.msra.gmra.mxu2 %v707_v12  ;;  %948 = vmatmul.bf16.vlgmr.msra.gmra.mxu3 %v707_v12 }
 0x1ea   :  { %v690_v13 = vpop.f32.mrf.mxu2 }
 0x1eb   :  { %v691_v14 = vadd.f32 %v2102_v1, %v690_v13 }
 0x1ed   :  { %v705_v16 = vadd.f32 %v704_v15, %v691_v14 }
 0x1ef   :  { %v724_v17 = vpack.c.bf16 %v705_v16, %v705_v16 }
 0x1f1   :  { %829 = vmatmul.bf16.vlgmr.msra.gmra.mxu0 %v724_v17  ;;  %842 = vmatmul.bf16.vlgmr.msra.gmra.mxu1 %v724_v17 }
 0x1f2   :  { %1351 = vmatpush.bf16.msra.mxu0 %v2077_v54  ;;  %1364 = vmatpush.bf16.msra.mxu1 %v2085_v55 }
 0x1f6   :  { %1352 = vmatpush.bf16.msra.mxu0 %v2076_v56  ;;  %1365 = vmatpush.bf16.msra.mxu1 %v2084_v57 }
 0x1fa   :  { %1353 = vmatpush.bf16.msra.mxu0 %v2075_v58  ;;  %1366 = vmatpush.bf16.msra.mxu1 %v2083_v59 }
 0x1fe   :  { %1354 = vmatpush.bf16.msra.mxu0 %v2074_v60  ;;  %1367 = vmatpush.bf16.msra.mxu1 %v2082_v61 }
 0x202   :  { %1355 = vmatpush.bf16.msra.mxu0 %v2073_v62  ;;  %1368 = vmatpush.bf16.msra.mxu1 %v2081_v19 }
 0x206   :  { %1356 = vmatpush.bf16.msra.mxu0 %v2072_v0  ;;  %1369 = vmatpush.bf16.msra.mxu1 %v2080_v21 }
 0x20a   :  { %1357 = vmatpush.bf16.msra.mxu0 %v2071_v20  ;;  %1370 = vmatpush.bf16.msra.mxu1 %v2079_v23 }
 0x20e   :  { %1358 = vmatpush.bf16.msra.mxu0 %v2070_v22  ;;  %1371 = vmatpush.bf16.msra.mxu1 %v2078_v24 }
 0x26c   :  { %v936_v1 = vpop.f32.mrf.mxu2  ;;  %v949_v2 = vpop.f32.mrf.mxu3 }
 0x26e   :  { %v830_v5 = vpop.f32.mrf.mxu0  ;;  %v843_v6 = vpop.f32.mrf.mxu1 }
 0x26f   :  { %v937_v7 = vadd.f32 %v936_v1, %v830_v5  ;;  %v950_v8 = vadd.f32 %v949_v2, %v843_v6 }
 0x271   :  { %v959_v9 = vadd.f32 %v955_v3, %v937_v7  ;;  %v960_v10 = vadd.f32 %v956_v4, %v950_v8 }
 0x273   :  { %v961_v11 = vmax.f32 %v959_v9, 0.0  ;;  %v962_v12 = vmax.f32 %v960_v10, 0.0 }
 0x274   :  { %v938_v13 = vpop.f32.mrf.mxu2  ;;  %v951_v14 = vpop.f32.mrf.mxu3 }
 0x275   :  { %v963_v15 = vpack.c.bf16 %v961_v11, %v961_v11  ;;  %v964_v16 = vpack.c.bf16 %v962_v12, %v962_v12 }
 0x276   :  { %v832_v17 = vpop.f32.mrf.mxu0  ;;  %v845_v18 = vpop.f32.mrf.mxu1 }
 0x277   :  { %1171 = vmatmul.bf16.vlgmr.msrb.gmra.mxu0 %v963_v15  ;;  %1184 = vmatmul.bf16.vlgmr.msrb.gmra.mxu1 %v964_v16 }
 0x278   :  { %1197 = vmatmul.bf16.vlgmr.msrb.gmra.mxu2 %v963_v15  ;;  %1210 = vmatmul.bf16.vlgmr.msrb.gmra.mxu3 %v964_v16 }
 0x2f4   :  { %v1172_v27 = vpop.f32.mrf.mxu0  ;;  %v1185_v28 = vpop.f32.mrf.mxu1 }
 0x2f5   :  { %v1173_v29 = vadd.f32 %v1172_v27, %v999_v26 }
 0x2f7   :  { %v1186_v30 = vadd.f32 %v1185_v28, %v1173_v29 }
 0x2f9   :  { %v1215_v32 = vmax.f32 %v1186_v30, 0.0 }
 0x2fb   :  { %v1217_v33 = vpack.c.bf16 %v1215_v32, %v1215_v32  ;;  %v1198_v34 = vpop.f32.mrf.mxu2  ;;  %v1211_v35 = vpop.f32.mrf.mxu3 }
 0x2fc   :  { %v1199_v36 = vadd.f32 %v1198_v34, %v1000_v31  ;;  %v1174_v37 = vpop.f32.mrf.mxu0  ;;  %v1187_v38 = vpop.f32.mrf.mxu1 }
 0x2fd   :  { %1359 = vmatmul.bf16.vlgmr.msra.gmra.mxu0 %v1217_v33 }
 0x2fe   :  { %v1212_v39 = vadd.f32 %v1211_v35, %v1199_v36 }
 0x300   :  { %v1216_v40 = vmax.f32 %v1212_v39, 0.0 }
 0x302   :  { %v1218_v41 = vpack.c.bf16 %v1216_v40, %v1216_v40 }
 0x303   :  { %v1200_v42 = vpop.f32.mrf.mxu2  ;;  %v1213_v43 = vpop.f32.mrf.mxu3 }
 0x304   :  { %1372 = vmatmul.bf16.vlgmr.msra.gmra.mxu1 %v1218_v41 }
 0x37a   :  { %v1360_v44 = vpop.f32.mrf.mxu0 }
 0x37b   :  { %v1361_v46 = vadd.f32 %v2103_v45, %v1360_v44 }
 0x381   :  { %v1373_v47 = vpop.f32.mrf.mxu1 }
 0x382   :  { %v1374_v48 = vadd.f32 %v1373_v47, %v1361_v46  ;;  %v1362_v49 = vpop.f32.mrf.mxu0 }
 0x384   :  { %2104 = vtanh.f32 %v1374_v48 }
 0x389   :  { %v1375_v50 = vpop.f32.mrf.mxu1 }
 0x38a   :  { %v2105_v51 = vpop.eup %2104 }
 0x38b   :  { %v1378_v52 = vmul.f32 2.0, %v2105_v51 }
 0x38d   :  { %1380 = vst [vmem:[#allocation21] sm:$0xff] %v1378_v52 }
 0x38e   :  { %1402 = dma.vmem_to_hbm [thread:$0]  %s1398_s29, 128, %s1400_s30, [#allocation22]  }
 0x38f   :  { %2406 = dma.done.wait [#allocation5], 128  }
 0x390   :  { %2407 = vsyncadd [#allocation5], 4294967168 }
 0x391   :  { %2408 = dma.done.wait [#allocation22], 128  }
 0x392   :  { %2409 = vsyncadd [#allocation22], 4294967168 }
 0x393   :  { %1411 = vsyncpa [#allocation4], 1 }
 0x394   :  { %1412 = vsyncpa [#allocation7], 1 }
 0x395   :  { %1413 = vsyncpa [#allocation10], 1 }
 0x396   :  { %1414 = vsyncpa [#allocation13], 1 }
 0x397   :  { %1415 = vsyncpa [#allocation16], 1 }
 0x398   :  { %1416 = vsyncpa [#allocation19], 1 }
 0x399   :  { %1417 = vsyncpa [#allocation5], 1 }
 0x39a   :  { %1418 = vsyncpa [#allocation22], 1 }

</bundles_post_ra>
